<compile_context>
chip_gen: v7x
topology: tpu7x:2x2x1
jax: 0.10.0
libtpu: 0.0.40
codegen_flags: <defaults>
</compile_context>

<pallas_src>
import jax
import jax.numpy as jnp
from jax import lax
from jax.experimental import pallas as pl
from jax.experimental.pallas import tpu as pltpu


def _cdiv(a, b):
    return -(-a // b)


def _round_up(n, m):
    return _cdiv(n, m) * m


def rbf_net_kernel(x_ref, ct2s_ref, c2s_ref, nisig2_ref, w_ref, b_ref, o_ref):
    x = x_ref[...]                                            # (TB, D_in) f32

    # arg = -||x - c||^2 / sigma^2 with the sigma/centre factors prefolded:
    #   arg = ||x||^2 * (-1/s^2) + x . (2 c / s^2) - ||c||^2 / s^2
    x2 = jnp.sum(x * x, axis=-1, keepdims=True)               # (TB, 1)
    xc = jnp.dot(x, ct2s_ref[...],
                 preferred_element_type=jnp.float32)          # (TB, C)   MXU
    arg = x2 * nisig2_ref[...] + xc + c2s_ref[...]            # (TB, C)   VPU
    gauss = jnp.exp(arg)                                      # (TB, C)   EUP

    # Transposed projection: out^T = W @ gauss^T -> (D_out, TB).  Batch on
    # lanes => dense bias add and unmasked stores.
    out_t = lax.dot_general(
        w_ref[...], gauss,
        dimension_numbers=(((1,), (1,)), ((), ())),
        preferred_element_type=jnp.float32)                   # (D_out, TB)
    o_ref[...] = out_t + b_ref[...]                           # bias (D_out, 1)


def _pick_batch_tiling(B, block_b, min_tiles):
    """Choose (tile_rows, num_tiles) for the batch grid axis.

    Single-step grid when the batch fits one tile (no per-step overhead,
    best on single-TC v5e/v6e).  Otherwise balanced tiles rounded up to a
    multiple of 128 (batch is the lane dim of the transposed output) with an
    even tile count so v7x's two TensorCores split the parallel axis.
    """
    n = max(min_tiles, _cdiv(B, block_b))
    if n <= 1 or B <= 128:
        return B, 1
    n = _round_up(n, 2)
    tb = _round_up(_cdiv(B, n), 128)
    return tb, _cdiv(B, tb)


def rbf_net_forward(x, centres, sigmas, w, b, *, block_b=2048, min_tiles=2):
    """Forward pass of RBF_Net (one RBF layer + one Linear layer).

    x: (B, D_in); centres: (C, D_in); sigmas: (C,); w: (D_out, C); b: (D_out,).
    Returns (B, D_out) float32.
    """
    B, D_in = x.shape
    C = centres.shape[0]
    D_out = w.shape[0]

    x = x.astype(jnp.float32)
    centres = centres.astype(jnp.float32)
    sigmas = sigmas.astype(jnp.float32)

    # Parameter prep (weights only; amortizes across calls).
    inv_sig2 = 1.0 / (sigmas * sigmas)                        # (C,)
    ct2s = (2.0 * centres * inv_sig2[:, None]).T              # (D_in, C)
    c2s = (-jnp.sum(centres * centres, axis=-1) * inv_sig2).reshape(1, C)
    nisig2 = (-inv_sig2).reshape(1, C)                        # (1, C)
    wf = w.astype(jnp.float32)                                # (D_out, C)
    bf = b.astype(jnp.float32).reshape(D_out, 1)              # (D_out, 1)

    tb, grid_b = _pick_batch_tiling(B, block_b, min_tiles)

    out_t = pl.pallas_call(
        rbf_net_kernel,
        out_shape=jax.ShapeDtypeStruct((D_out, B), jnp.float32),
        grid_spec=pltpu.PrefetchScalarGridSpec(
            num_scalar_prefetch=0,
            grid=(grid_b,),
            in_specs=[
                pl.BlockSpec((tb, D_in), lambda i: (i, 0)),   # x: streamed
                pl.BlockSpec((D_in, C), lambda i: (0, 0)),    # 2*C^T/s^2
                pl.BlockSpec((1, C), lambda i: (0, 0)),       # -||c||^2/s^2
                pl.BlockSpec((1, C), lambda i: (0, 0)),       # -1/s^2
                pl.BlockSpec((D_out, C), lambda i: (0, 0)),   # W
                pl.BlockSpec((D_out, 1), lambda i: (0, 0)),   # bias
            ],
            out_specs=pl.BlockSpec((D_out, tb), lambda i: (0, i)),
        ),
        compiler_params=pltpu.CompilerParams(
            # Batch tiles are independent -> v7x's two TensorCores split them.
            dimension_semantics=("parallel",),
            # Plenty of headroom on all generations; if C grows to many
            # thousands, re-derive tb against v7x's 64 MiB VMEM.
            vmem_limit_bytes=32 * 1024 * 1024,
        ),
    )(x, ct2s, c2s, nisig2, wf, bf)

    # Tiny (D_out, B) un-transpose back to the module's (B, D_out) layout.
    return out_t.T


def rbf_net_reference(x, centres, sigmas, w, b):
    # Pure-JAX reference mirroring the PyTorch forward exactly (all f32;
    # HIGHEST matmul precision so the comparison is against true f32 math).
    diff = x[:, None, :] - centres[None, :, :]                  # (B, C, D_in)
    dist = jnp.sqrt(jnp.sum(diff * diff, axis=-1)) / sigmas[None, :]
    gauss = jnp.exp(-(dist ** 2))
    return jnp.dot(gauss, w.T, precision=lax.Precision.HIGHEST) + b[None, :]


if __name__ == "__main__":
    # Small shapes consistent with the module (one RBF layer + one Linear).
    D_in = 8        # layer_widths[0]
    C = 128         # layer_centres[0]
    D_out = 8       # layer_widths[1]

    key = jax.random.PRNGKey(0)
    kx, kc, kw, kb = jax.random.split(key, 4)

    # RBF parameters: centres ~ N(0, 1), sigmas = 0.5 (as in reset_parameters).
    centres = jax.random.normal(kc, (C, D_in), dtype=jnp.float32)
    sigmas = jnp.full((C,), 0.5, dtype=jnp.float32)

    # Linear parameters: uniform init matching nn.Linear's bound.
    bound = 1.0 / jnp.sqrt(jnp.float32(C))
    w = jax.random.uniform(kw, (D_out, C), minval=-bound, maxval=bound,
                           dtype=jnp.float32)
    b = jax.random.uniform(kb, (D_out,), minval=-bound, maxval=bound,
                           dtype=jnp.float32)

    # Case 1: small batch -> single-step grid (whole batch in one tile).
    x_small = jax.random.normal(kx, (40, D_in), dtype=jnp.float32)
    out_small = jax.block_until_ready(
        rbf_net_forward(x_small, centres, sigmas, w, b))
    ref_small = rbf_net_reference(x_small, centres, sigmas, w, b)
    assert out_small.shape == (40, D_out)
    assert jnp.allclose(out_small, ref_small, atol=2e-4, rtol=2e-4), (
        f"max abs err {jnp.max(jnp.abs(out_small - ref_small))}")

    # Case 2: multi-step grid with a ragged (masked) final batch tile:
    # B=300, block_b=128 -> tb=128, grid=3, last tile has 44 valid rows.
    x_big = jax.random.normal(kx, (300, D_in), dtype=jnp.float32)
    out_big = jax.block_until_ready(
        rbf_net_forward(x_big, centres, sigmas, w, b, block_b=128))
    ref_big = rbf_net_reference(x_big, centres, sigmas, w, b)
    assert out_big.shape == (300, D_out)
    assert jnp.allclose(out_big, ref_big, atol=2e-4, rtol=2e-4), (
        f"max abs err {jnp.max(jnp.abs(out_big - ref_big))}")

    print("KERNEL_OK")
</pallas_src>

<mosaic_0001>
module attributes {stable_mosaic.version = 11 : i64} {
  func.func @rbf_net_kernel(%arg0: i32, %arg1: memref<40x8xf32, #tpu.memory_space<vmem>>, %arg2: memref<8x128xf32, #tpu.memory_space<vmem>>, %arg3: memref<1x128xf32, #tpu.memory_space<vmem>>, %arg4: memref<1x128xf32, #tpu.memory_space<vmem>>, %arg5: memref<8x128xf32, #tpu.memory_space<vmem>>, %arg6: memref<8x1xf32, #tpu.memory_space<vmem>>, %arg7: memref<8x40xf32, #tpu.memory_space<vmem>>) attributes {dimension_semantics = [#tpu.dimension_semantics<parallel>], iteration_bounds = array<i64: 1>, scalar_prefetch = 0 : i64, scratch_operands = 0 : i64, tpu.core_type = #tpu.core_type<tc>, window_params = [{transform_indices = @transform_0, window_bounds = array<i64: 40, 8>}, {pipeline_mode = #tpu.pipeline_mode<synchronous>, transform_indices = @transform_1, window_bounds = array<i64: 8, 128>}, {pipeline_mode = #tpu.pipeline_mode<synchronous>, transform_indices = @transform_2, window_bounds = array<i64: 1, 128>}, {pipeline_mode = #tpu.pipeline_mode<synchronous>, transform_indices = @transform_3, window_bounds = array<i64: 1, 128>}, {pipeline_mode = #tpu.pipeline_mode<synchronous>, transform_indices = @transform_4, window_bounds = array<i64: 8, 128>}, {pipeline_mode = #tpu.pipeline_mode<synchronous>, transform_indices = @transform_5, window_bounds = array<i64: 8, 1>}, {transform_indices = @transform_6, window_bounds = array<i64: 8, 40>}]} {
    %c0 = arith.constant 0 : index
    %c0_0 = arith.constant 0 : index
    %0 = vector.load %arg1[%c0, %c0_0] : memref<40x8xf32, #tpu.memory_space<vmem>>, vector<40x8xf32>
    %1 = arith.mulf %0, %0 : vector<40x8xf32>
    %cst = arith.constant dense<0.000000e+00> : vector<40xf32>
    %2 = vector.multi_reduction <add>, %1, %cst [1] : vector<40x8xf32> to vector<40xf32>
    %3 = vector.shape_cast %2 : vector<40xf32> to vector<40x1xf32>
    %c0_1 = arith.constant 0 : index
    %c0_2 = arith.constant 0 : index
    %4 = vector.load %arg2[%c0_1, %c0_2] : memref<8x128xf32, #tpu.memory_space<vmem>>, vector<8x128xf32>
    %cst_3 = arith.constant dense<0.000000e+00> : vector<40x128xf32>
    %5 = tpu.matmul %0, %4, %cst_3 {dimension_numbers = #tpu.dot_dimension_numbers<[1], [0], [0], [1], [0, 0, 1, 1], [], []>} : vector<40x8xf32>, vector<8x128xf32>, vector<40x128xf32> -> vector<40x128xf32>
    %c0_4 = arith.constant 0 : index
    %c0_5 = arith.constant 0 : index
    %6 = vector.load %arg4[%c0_4, %c0_5] : memref<1x128xf32, #tpu.memory_space<vmem>>, vector<1x128xf32>
    %7 = vector.broadcast %3 : vector<40x1xf32> to vector<40x128xf32>
    %8 = vector.broadcast %6 : vector<1x128xf32> to vector<40x128xf32>
    %9 = arith.mulf %7, %8 : vector<40x128xf32>
    %10 = arith.addf %9, %5 : vector<40x128xf32>
    %c0_6 = arith.constant 0 : index
    %c0_7 = arith.constant 0 : index
    %11 = vector.load %arg3[%c0_6, %c0_7] : memref<1x128xf32, #tpu.memory_space<vmem>>, vector<1x128xf32>
    %12 = vector.broadcast %11 : vector<1x128xf32> to vector<40x128xf32>
    %13 = arith.addf %10, %12 : vector<40x128xf32>
    %14 = math.exp %13 : vector<40x128xf32>
    %c0_8 = arith.constant 0 : index
    %c0_9 = arith.constant 0 : index
    %15 = vector.load %arg5[%c0_8, %c0_9] : memref<8x128xf32, #tpu.memory_space<vmem>>, vector<8x128xf32>
    %cst_10 = arith.constant dense<0.000000e+00> : vector<8x40xf32>
    %16 = tpu.matmul %15, %14, %cst_10 {dimension_numbers = #tpu.dot_dimension_numbers<[1], [1], [0], [0], [0, 0, 1, 0], [], []>} : vector<8x128xf32>, vector<40x128xf32>, vector<8x40xf32> -> vector<8x40xf32>
    %c0_11 = arith.constant 0 : index
    %c0_12 = arith.constant 0 : index
    %17 = vector.load %arg6[%c0_11, %c0_12] : memref<8x1xf32, #tpu.memory_space<vmem>>, vector<8x1xf32>
    %18 = vector.broadcast %17 : vector<8x1xf32> to vector<8x40xf32>
    %19 = arith.addf %16, %18 : vector<8x40xf32>
    %c0_13 = arith.constant 0 : index
    %c0_14 = arith.constant 0 : index
    %20 = vector.load %arg7[%c0_13, %c0_14] : memref<8x40xf32, #tpu.memory_space<vmem>>, vector<8x40xf32>
    tpu.vector_store %arg7[%c0_13, %c0_14], %19 {strides = array<i32>} : memref<8x40xf32, #tpu.memory_space<vmem>>, vector<8x40xf32>,
    return
  }
  func.func @transform_0(%arg0: i32) -> (i32, i32) {
    %c0_i32 = arith.constant 0 : i32
    %c0_i32_0 = arith.constant 0 : i32
    return %arg0, %c0_i32 : i32, i32
  }
  func.func @transform_1(%arg0: i32) -> (i32, i32) {
    %c0_i32 = arith.constant 0 : i32
    %c0_i32_0 = arith.constant 0 : i32
    %c0_i32_1 = arith.constant 0 : i32
    return %c0_i32, %c0_i32_0 : i32, i32
  }
  func.func @transform_2(%arg0: i32) -> (i32, i32) {
    %c0_i32 = arith.constant 0 : i32
    %c0_i32_0 = arith.constant 0 : i32
    %c0_i32_1 = arith.constant 0 : i32
    return %c0_i32, %c0_i32_0 : i32, i32
  }
  func.func @transform_3(%arg0: i32) -> (i32, i32) {
    %c0_i32 = arith.constant 0 : i32
    %c0_i32_0 = arith.constant 0 : i32
    %c0_i32_1 = arith.constant 0 : i32
    return %c0_i32, %c0_i32_0 : i32, i32
  }
  func.func @transform_4(%arg0: i32) -> (i32, i32) {
    %c0_i32 = arith.constant 0 : i32
    %c0_i32_0 = arith.constant 0 : i32
    %c0_i32_1 = arith.constant 0 : i32
    return %c0_i32, %c0_i32_0 : i32, i32
  }
  func.func @transform_5(%arg0: i32) -> (i32, i32) {
    %c0_i32 = arith.constant 0 : i32
    %c0_i32_0 = arith.constant 0 : i32
    %c0_i32_1 = arith.constant 0 : i32
    return %c0_i32, %c0_i32_0 : i32, i32
  }
  func.func @transform_6(%arg0: i32) -> (i32, i32) {
    %c0_i32 = arith.constant 0 : i32
    %c0_i32_0 = arith.constant 0 : i32
    return %c0_i32, %arg0 : i32, i32
  }
}

</mosaic_0001>

<bundles_post_ra>
// kernel: tpu_custom_call.1
= control target key start
LH: loop header
LB: loop body
LE: loop exit
PB: predicated region body
PF: predicated region fallthrough
CT: control target
= control target key end

     0   :  { %vm34_vm0 = vcmask 64512   ;;  %v384_v3 = vmov 0.0   ;;  %vm385_vm1 = vmmov 0   ;;  %s490_s0 = inlined_call_operand.vmem [shape: f32[40,8], index: 0, kind: input, shape index: {}]   ;;  %s491_s1 = inlined_call_operand.vmem [shape: f32[8,128], index: 1, kind: input, shape index: {}]   ;;  %s492_s2 = inlined_call_operand.vmem [shape: f32[1,128], index: 2, kind: input, shape index: {}]   ;;  %s493_s3 = inlined_call_operand.vmem [shape: f32[1,128], index: 3, kind: input, shape index: {}]   ;;  %s494_s4 = inlined_call_operand.vmem [shape: f32[8,128], index: 4, kind: input, shape index: {}]   ;;  %s495_s5 = inlined_call_operand.vmem [shape: f32[8,1], index: 5, kind: input, shape index: {}]   ;;  %s496_s6 = inlined_call_operand.hbm [shape: f32[8,40], index: 6, kind: output, shape index: {}]  }
   0x1   :  { %v50_v0 = vld [vmem:[%s491_s1] sm:$0xff]  ;;  %v25_v2 = vld [vmem:[%s490_s0 + $0x8] sm:$0xff]  ;;  %307 = vmatprep.subr.mxu0 %v384_v3  ;;  %309 = vmatprep.mubr.msk.f32.mxu0 %vm385_vm1, %v384_v3  ;;  %v26_v4 = vld [vmem:[%s490_s0 + $0x10] sm:$0xff] }
   0x2   :  { %v24_v1 = vld [vmem:[%s490_s0] sm:$0xff]  ;;  %v27_v5 = vld [vmem:[%s490_s0 + $0x18] sm:$0xff]  ;;  %v30_v7 = vmul.f32 %v25_v2, %v25_v2  ;;  %308 = vmatpush3.msra.mxu0 %v50_v0  ;;  %v31_v8 = vmul.f32 %v26_v4, %v26_v4  ;;  %334 = vmatprep.mubr.msk.f32.mxu1 %vm385_vm1, %v384_v3 }
   0x3   :  { %v29_v6 = vmul.f32 %v24_v1, %v24_v1  ;;  %v32_v9 = vmul.f32 %v27_v5, %v27_v5 }
   0x4   :  { %11 = vsyncpa [#allocation3], 0  ;;  %310 = vmatmul.mubr.msk.f32.vlgmr.msra.gmra.mrb[0].mxu0 %vm34_vm0, %v24_v1  ;;  %v28_v11 = vld [vmem:[%s490_s0 + $0x20] sm:$0xff]  ;;  %v41_v12 = vsel %vm34_vm0, %v31_v8, 0.0  ;;  %v38_v13 = vsel %vm34_vm0, %v30_v7, 0.0  ;;  %v386_v17 = vmov 0.0|0.0  }
   0x5   :  { %v35_v10 = vsel %vm34_vm0, %v29_v6, 0.0  ;;  %312 = vmatprep.mubr.msk.f32.mxu0 %vm385_vm1, %v384_v3  ;;  %42 = vadd.xlane.f32.xlu1 %v41_v12  ;;  %v33_v14 = vmul.f32 %v28_v11, %v28_v11  ;;  %v44_v15 = vsel %vm34_vm0, %v32_v9, 0.0  ;;  %v196_v18 = vld [vmem:[%s495_s5] sm:$0xff]  ;;  %v387_v19 = vmov 0   ;;  %s388_s5 = smov [#allocation2]  }
   0x6   :  { %36 = vadd.xlane.f32.xlu0 %v35_v10  ;;  %337 = vmatprep.subr.bf16.mxu1 %v386_v17  ;;  %v293_v21 = vld [vmem:[%s493_s3] ss:$0 sm:$0xff]  ;;  %s280_s13 = sshll.u32 %s388_s5, 4  ;;  %vm272_vm2 = vcmask 326656   ;;  %s281_s13 = int_to_ptr.vmem [resolvable:$true] %s280_s13 }
   0x7   :  { %v47_v16 = vsel %vm34_vm0, %v33_v14, 0.0  ;;  %348 = vset.pattern.permute.xlu1 %v387_v19  ;;  %349 = vset.pattern.permute.xlu0 %v387_v19  ;;  %v294_v25 = vld [vmem:[%s492_s2] ss:$0 sm:$0xff]  ;;  %s360_s14 = scalar_lea.vmem %s281_s13, 128  ;;  %p365_p1 = scmp.lt.s32.totalorder %s281_s13, %s281_s13 }
   0x8   :  { %313 = vmatmul.mubr.msk.f32.gmra.mrb[2].mxu0 %vm34_vm0, %v25_v2  ;;  %v195_v0 = vld [vmem:[%s494_s4] sm:$0xff]  ;;  %p361_p0 = scmp.ne.s32.totalorder %s281_s13, %s360_s14  ;;  %p366_p2 = scmp.lt.s32.totalorder %s360_s14, %s360_s14 }
   0x9   :  { %315 = vmatprep.mubr.msk.f32.mxu0 %vm385_vm1, %v384_v3  ;;  %45 = vadd.xlane.f32.xlu1 %v44_v15 }
   0xa   :  { %39 = vadd.xlane.f32.xlu0 %v38_v13  ;;  %p367_p3 = por %p366_p2, %p365_p1 }
   0xc   :  { %316 = vmatmul.mubr.msk.f32.gmra.mrb[4].mxu0 %vm34_vm0, %v26_v4  ;;  %p368_p4 = pnand %p367_p3, %p361_p0 }
   0xd   :  { %318 = vmatprep.mubr.msk.f32.mxu0 %vm385_vm1, %v384_v3 }
   0xe   :  { %48 = vadd.xlane.f32.xlu0 %v47_v16 }
  0x10   :  { %319 = vmatmul.mubr.msk.f32.gmra.mrb[6].mxu0 %vm34_vm0, %v27_v5 }
  0x11   :  { %321 = vmatprep.mubr.msk.f32.mxu0 %vm385_vm1, %v384_v3 }
  0x14   :  { %322 = vmatmul.mubr.msk.f32.gmra.mrb[8].mxu0 %vm34_vm0, %v28_v11 }
  0x1a   :  { %199 = vperm.xlu1 %348, %v196_v18  }
  0x92   :  { %v43_v26 = vpop.xlane.xlu1 %42 }
  0x93   :  { %v37_v20 = vpop.xlane.xlu0 %36  ;;  %v165_v34 = vmul.f32 %v293_v21, %v43_v26 }
  0x94   :  { %v163_v22 = vmul.f32 %v293_v21, %v37_v20 }
  0x96   :  { %v46_v36 = vpop.xlane.xlu1 %45 }
  0x97   :  { %v40_v23 = vpop.xlane.xlu0 %39  ;;  %v166_v42 = vmul.f32 %v293_v21, %v46_v36 }
  0x98   :  { %v164_v29 = vmul.f32 %v293_v21, %v40_v23 }
  0x9a   :  { %v200_v1 = vpop.permute.xlu1 %199 }
  0x9b   :  { %v49_v43 = vpop.xlane.xlu0 %48 }
  0x9c   :  { %v167_v48 = vmul.f32 %v293_v21, %v49_v43 }
  0xd7   :  { %v132_v24 = vpop.f32.mrb[0].mxu0 }
  0xd8   :  { %v168_v27 = vadd.f32 %v163_v22, %v132_v24  ;;  %v311_v28 = vpop.f32.mrb[1].mxu0 }
  0xda   :  { %v180_v30 = vadd.f32 %v294_v25, %v168_v27 }
  0xdb   :  { %v137_v31 = vpop.f32.mrb[2].mxu0 }
  0xdc   :  { %v169_v32 = vadd.f32 %v164_v29, %v137_v31  ;;  %v314_v33 = vpop.f32.mrb[3].mxu0  ;;  %v185_v35 = vmul.f32 1.442695, %v180_v30 }
  0xde   :  { %v181_v37 = vadd.f32 %v294_v25, %v169_v32  ;;  %350 = vpow2.f32 %v185_v35 }
  0xdf   :  { %v142_v38 = vpop.f32.mrb[4].mxu0 }
  0xe0   :  { %v187_v39 = vmul.f32 1.442695, %v181_v37  ;;  %v170_v40 = vadd.f32 %v165_v34, %v142_v38  ;;  %v317_v41 = vpop.f32.mrb[5].mxu0 }
  0xe2   :  { %352 = vpow2.f32 %v187_v39  ;;  %v182_v44 = vadd.f32 %v294_v25, %v170_v40 }
  0xe3   :  { %v147_v45 = vpop.f32.mrb[6].mxu0 }
  0xe4   :  { %v171_v46 = vadd.f32 %v166_v42, %v147_v45  ;;  %v320_v47 = vpop.f32.mrb[7].mxu0  ;;  %v189_v49 = vmul.f32 1.442695, %v182_v44 }
  0xe6   :  { %v183_v50 = vadd.f32 %v294_v25, %v171_v46  ;;  %354 = vpow2.f32 %v189_v49 }
  0xe7   :  { %v152_v51 = vpop.f32.mrb[8].mxu0 }
  0xe8   :  { %v191_v52 = vmul.f32 1.442695, %v183_v50  ;;  %v172_v53 = vadd.f32 %v167_v48, %v152_v51  ;;  %v323_v54 = vpop.f32.mrb[9].mxu0  ;;  %v351_v56 = vpop.eup %350 }
  0xea   :  { %356 = vpow2.f32 %v191_v52  ;;  %v184_v55 = vadd.f32 %v294_v25, %v172_v53 }
  0xec   :  { %v353_v57 = vpop.eup %352  ;;  %v193_v59 = vmul.f32 1.442695, %v184_v55 }
  0xed   :  { %v338_v58 = vpack.c.bf16 %v353_v57, %v351_v56 }
  0xee   :  { %358 = vpow2.f32 %v193_v59 }
  0xef   :  { %339 = vmatpush3.bf16.xpose.msra.mxu1 %v338_v58 }
  0xf0   :  { %340 = vmatprep.subr.bf16.mxu1 %v386_v17  ;;  %v355_v60 = vpop.eup %354 }
  0xf4   :  { %v357_v61 = vpop.eup %356 }
  0xf5   :  { %v341_v62 = vpack.c.bf16 %v357_v61, %v355_v60 }
  0xf7   :  { %342 = vmatpush3.bf16.xpose.msra.mxu1 %v341_v62 }
  0xf8   :  { %332 = vmatprep.subr.mxu1 %v384_v3  ;;  %v359_v63 = vpop.eup %358 }
  0xff   :  { %333 = vmatpush3.xpose.msra.mxu1 %v359_v63 }
 0x102   :  { %335 = vmatmul.mubr.f32.vlgmr.msra.gmra.mrb[0].mxu1 %v195_v0 }
 0x1d5   :  { %v268_v2 = vpop.f32.mrb[0].mxu1 }
 0x1d6   :  { %v269_v4 = vadd.f32 %v268_v2, %v200_v1  ;;  %v336_v5 = vpop.f32.mrb[1].mxu1 }
 0x1d8   :  { %273 = vst.msk [vmem:[#allocation2] sm:$0xff] %vm272_vm2, %v269_v4 }
 0x1d9   :  { %371 = shalt.err (!%p368_p4)
}
 0x1da   :  { %s372_s4 = scalar_lea.hbm %s496_s6, 128 }
 0x1db   :  { %p373_p5 = scmp.ne.s32.totalorder %s496_s6, %s372_s4  ;;  %p376_p6 = scmp.lt.u32.totalorder %s372_s4, %s496_s6 }
 0x1dd   :  { %p378_p7 = pnand %p376_p6, %p373_p5 }
 0x1df   :  { %381 = shalt.err (!%p378_p7)
}
 0x1e0   :  { %283 = dma.vmem_to_hbm [thread:$0]  %s281_s13, 128, %s496_s6, [#allocation3]  }
 0x1e1   :  { %382 = dma.done.wait [#allocation3], 128  }
 0x1e2   :  { %383 = vsyncadd [#allocation3], 4294967168 }
 0x1e3   :  { %287 = vsyncpa [#allocation3], 1 }

</bundles_post_ra>
